<compile_context>
chip_gen: v7x
topology: tpu7x:2x2x1
jax: 0.10.0
libtpu: 0.0.40
codegen_flags: <defaults>
</compile_context>

<pallas_src>
import functools

import jax
import jax.numpy as jnp
from jax.experimental import pallas as pl
from jax.experimental.pallas import tpu as pltpu


# ----------------------------------------------------------------------------
# helpers
# ----------------------------------------------------------------------------
def _round_up(x, m):
    return (x + m - 1) // m * m


def _pad2d(x, rows, cols):
    return jnp.pad(x, ((0, rows - x.shape[0]), (0, cols - x.shape[1])))


# ----------------------------------------------------------------------------
# Pallas matmul kernels: C = [relu](A @ B + bias), bf16 x bf16 -> f32 acc -> out dtype
# ----------------------------------------------------------------------------
def _matmul_kernel(a_ref, b_ref, bias_ref, o_ref, *acc_scratch, relu, n_k):
    if n_k == 1:
        acc = jnp.dot(a_ref[...], b_ref[...], preferred_element_type=jnp.float32)
        acc = acc + bias_ref[...]
        if relu:
            acc = jnp.maximum(acc, 0.0)
        o_ref[...] = acc.astype(o_ref.dtype)
    else:
        # f32 VMEM scratch accumulator (output may be bf16); not hit at current sizes.
        acc_ref, = acc_scratch
        k = pl.program_id(2)

        @pl.when(k == 0)
        def _():
            acc_ref[...] = jnp.zeros_like(acc_ref)

        acc_ref[...] += jnp.dot(a_ref[...], b_ref[...],
                                preferred_element_type=jnp.float32)

        @pl.when(k == n_k - 1)
        def _():
            acc = acc_ref[...] + bias_ref[...]
            if relu:
                acc = jnp.maximum(acc, 0.0)
            o_ref[...] = acc.astype(o_ref.dtype)


def _pick_tiles(M, Kp, Np, extra_parallel=1):
    """tm in multiples of 16 (bf16 packs 2 rows per sublane), single-K tile whenever Kp fits,
    tn=256 when Np allows (v6e/v7x 2x256 MXU) and >= 2 parallel (phase, M, N) blocks overall
    so both v7x TensorCores get work."""
    tm = min(_round_up(M, 16), 512)
    if Kp <= 4096:                       # true for every layer here (max Kp = 4096)
        tk = Kp
    else:
        tk = 2048
        while Kp % tk:                   # Kp is a multiple of 128 -> terminates
            tk //= 2
    tn = 256 if Np % 256 == 0 else 128

    def blocks(tm_, tn_):
        return extra_parallel * (_round_up(M, tm_) // tm_) * (Np // tn_)

    while blocks(tm, tn) < 2 and tm >= 32 and tm % 32 == 0:
        tm //= 2
    if blocks(tm, tn) < 2 and tn == 256:
        tn = 128
    return tm, tk, tn


def matmul_bias_act(a, b_p, bias_p, relu=False, out_dtype=jnp.bfloat16):
    """a: (M, K) activations; b_p: (Kp, Np) bf16 pre-padded weights (Kp = round_up(K, 128));
    bias_p: (1, Np) f32.  Returns (M, Np) in out_dtype - channel padding is KEPT so the
    next layer's input stays lane-dense (no per-layer slice/cast passes)."""
    M, K = a.shape
    Kp, Np = b_p.shape
    assert Kp >= K and Kp % 128 == 0 and Np % 128 == 0

    tm, tk, tn = _pick_tiles(M, Kp, Np)
    Mp = _round_up(M, tm)
    n_k = Kp // tk

    a_p = a.astype(jnp.bfloat16)
    if (Mp, Kp) != (M, K):
        a_p = jnp.pad(a_p, ((0, Mp - M), (0, Kp - K)))

    grid = (Mp // tm, Np // tn, n_k)
    scratch = [] if n_k == 1 else [pltpu.VMEM((tm, tn), jnp.float32)]
    out = pl.pallas_call(
        functools.partial(_matmul_kernel, relu=relu, n_k=n_k),
        out_shape=jax.ShapeDtypeStruct((Mp, Np), out_dtype),
        grid_spec=pltpu.PrefetchScalarGridSpec(
            num_scalar_prefetch=0,
            grid=grid,
            in_specs=[
                pl.BlockSpec((tm, tk), lambda i, j, k: (i, k)),
                pl.BlockSpec((tk, tn), lambda i, j, k: (k, j)),
                pl.BlockSpec((1, tn), lambda i, j, k: (0, j)),
            ],
            out_specs=pl.BlockSpec((tm, tn), lambda i, j, k: (i, j)),
            scratch_shapes=scratch),
        compiler_params=pltpu.CompilerParams(
            dimension_semantics=("parallel", "parallel", "arbitrary")),
    )(a_p, b_p, bias_p)
    if Mp != M:
        out = out[:M]
    return out


def _phase_matmul_kernel(a_ref, b_ref, bias_ref, o_ref, *, relu):
    acc = jnp.dot(a_ref[...], b_ref[...], preferred_element_type=jnp.float32)
    acc = acc + bias_ref[...]
    if relu:
        acc = jnp.maximum(acc, 0.0)
    o_ref[...] = acc.astype(o_ref.dtype)


def matmul_phases_bias_act(a_ph, b_ph, bias_p, relu=True, out_dtype=jnp.bfloat16):
    """All 4 deconv sub-pixel phases in ONE pallas_call (leading 'phase' grid axis with
    squeezed BlockSpecs).  a_ph: (P, M, K); b_ph: (P, Kp, Np) bf16; bias_p: (1, Np) f32.
    Returns (P, M, Np) in out_dtype."""
    P, M, K = a_ph.shape
    Pb, Kp, Np = b_ph.shape
    assert P == Pb and Kp >= K and Kp % 128 == 0 and Np % 128 == 0

    tm, tk, tn = _pick_tiles(M, Kp, Np, extra_parallel=P)
    assert tk == Kp, "fused phase matmul expects a single K step"
    Mp = _round_up(M, tm)

    a_p = a_ph.astype(jnp.bfloat16)
    if (Mp, Kp) != (M, K):
        a_p = jnp.pad(a_p, ((0, 0), (0, Mp - M), (0, Kp - K)))

    grid = (P, Mp // tm, Np // tn)
    out = pl.pallas_call(
        functools.partial(_phase_matmul_kernel, relu=relu),
        out_shape=jax.ShapeDtypeStruct((P, Mp, Np), out_dtype),
        grid_spec=pltpu.PrefetchScalarGridSpec(
            num_scalar_prefetch=0,
            grid=grid,
            in_specs=[
                pl.BlockSpec((None, tm, tk), lambda p, i, j: (p, i, 0)),
                pl.BlockSpec((None, tk, tn), lambda p, i, j: (p, 0, j)),
                pl.BlockSpec((1, tn), lambda p, i, j: (0, j)),
            ],
            out_specs=pl.BlockSpec((None, tm, tn), lambda p, i, j: (p, i, j))),
        compiler_params=pltpu.CompilerParams(
            dimension_semantics=("parallel", "parallel", "parallel")),
    )(a_p, b_ph, bias_p)
    if Mp != M:
        out = out[:, :M]
    return out


def _head_kernel(a_ref, w1_ref, b1_ref, w2_ref, b2_ref, o_ref):
    # 3x3 conv (as matmul) -> bias -> ReLU -> block-diagonal 1x1 conv, all fused:
    # the (tm, 384) intermediate never leaves VMEM.
    h = jnp.dot(a_ref[...], w1_ref[...], preferred_element_type=jnp.float32)
    h = jnp.maximum(h + b1_ref[...], 0.0)
    acc = jnp.dot(h.astype(jnp.bfloat16), w2_ref[...],
                  preferred_element_type=jnp.float32)
    o_ref[...] = (acc + b2_ref[...]).astype(o_ref.dtype)


def head_fused(x, w1_p, b1_p, w2_p, b2_p):
    """Fused CenterNet head: one pallas_call per forward.  x: (N, H, W, C128) bf16.
    Returns (N, H, W, Np2) f32 (channel padded)."""
    cols, n, oh, ow = _im2col(x, 3, 3, 1, 1)
    M, K = cols.shape
    K1p, N1 = w1_p.shape
    N1b, N2 = w2_p.shape
    assert N1b == N1 and K1p >= K

    tm = min(_round_up(M, 16), 256)
    if _round_up(M, tm) // tm < 2 and tm >= 32 and tm % 32 == 0:
        tm //= 2                           # expose >= 2 parallel blocks (v7x dual TC)
    Mp = _round_up(M, tm)

    a_p = cols.astype(jnp.bfloat16)
    if (Mp, K1p) != (M, K):
        a_p = jnp.pad(a_p, ((0, Mp - M), (0, K1p - K)))

    out = pl.pallas_call(
        _head_kernel,
        out_shape=jax.ShapeDtypeStruct((Mp, N2), jnp.float32),
        grid_spec=pltpu.PrefetchScalarGridSpec(
            num_scalar_prefetch=0,
            grid=(Mp // tm,),
            in_specs=[
                pl.BlockSpec((tm, K1p), lambda i: (i, 0)),
                pl.BlockSpec((K1p, N1), lambda i: (0, 0)),
                pl.BlockSpec((1, N1), lambda i: (0, 0)),
                pl.BlockSpec((N1, N2), lambda i: (0, 0)),
                pl.BlockSpec((1, N2), lambda i: (0, 0)),
            ],
            out_specs=pl.BlockSpec((tm, N2), lambda i: (i, 0))),
        compiler_params=pltpu.CompilerParams(
            dimension_semantics=("parallel",)),
    )(a_p, w1_p, b1_p, w2_p, b2_p)
    if Mp != M:
        out = out[:M]
    return out.reshape(n, oh, ow, N2)


# ----------------------------------------------------------------------------
# Conv / transposed-conv wrappers (im2col is JAX glue, fused by XLA under jit)
# ----------------------------------------------------------------------------
def _im2col(x, kh, kw, stride, padding):
    n, h, w, c = x.shape
    if padding:
        x = jnp.pad(x, ((0, 0), (padding, padding), (padding, padding), (0, 0)))
    oh = (h + 2 * padding - kh) // stride + 1
    ow = (w + 2 * padding - kw) // stride + 1
    if kh == 1 and kw == 1 and stride == 1:
        cols = x
    else:
        taps = []
        for i in range(kh):
            for j in range(kw):
                taps.append(x[:, i:i + stride * oh:stride, j:j + stride * ow:stride, :])
        cols = jnp.concatenate(taps, axis=-1)          # (N, OH, OW, KH*KW*C)
    return cols.reshape(n * oh * ow, kh * kw * c), n, oh, ow


def conv2d(x, wm_p, bias_p, kh, kw, stride=1, padding=0, relu=False,
           out_dtype=jnp.bfloat16):
    """x: NHWC (channels already padded to the weight's cin_pad)."""
    cols, n, oh, ow = _im2col(x, kh, kw, stride, padding)
    y = matmul_bias_act(cols, wm_p, bias_p, relu=relu, out_dtype=out_dtype)
    return y.reshape(n, oh, ow, wm_p.shape[1])


def conv_transpose2d_subpixel(x, b_stack, bias_p, relu=True, out_dtype=jnp.bfloat16):
    """Exact ConvTranspose2d(k=4, s=2, p=1) via sub-pixel decomposition: output pixel
    (2m+di, 2n+dj) is a 2x2 conv (phase (di,dj)) over the 1-padded input.  All 4 phases
    run in a single fused pallas_call."""
    n, h, w, c = x.shape
    _, _, Np = b_stack.shape
    xp = jnp.pad(x, ((0, 0), (1, 1), (1, 1), (0, 0)))
    phase_as = []
    for di in (0, 1):
        for dj in (0, 1):
            taps = [xp[:, di + p:di + p + h, dj + q:dj + q + w, :]
                    for p in (0, 1) for q in (0, 1)]
            phase_as.append(jnp.concatenate(taps, axis=-1).reshape(n * h * w, 4 * c))
    a_ph = jnp.stack(phase_as, 0)                                  # (4, M, 4*c)
    y = matmul_phases_bias_act(a_ph, b_stack, bias_p, relu=relu, out_dtype=out_dtype)
    y = y.reshape(2, 2, n, h, w, Np)                               # [di, dj, n, h, w, c]
    # TODO(synk): interleave the phases directly via the kernel's out index_map instead of
    #             this transpose pass (negligible at 64x64, one extra HBM pass at 512x512).
    y = jnp.transpose(y, (2, 3, 0, 4, 1, 5)).reshape(n, 2 * h, 2 * w, Np)
    return y


# ----------------------------------------------------------------------------
# CenterNet parameters (deterministic synthetic init) + matmul-ready preparation
# ----------------------------------------------------------------------------
NUM_CLASSES = 1          # e.g. 'person' for pose CenterNet
NUM_KEYPOINTS = 17
HEAD_CONV = 64

BACKBONE_CHANNELS = [3, 16, 24, 40, 112, 960]   # stride-2 each => /32 total
DECONV_CHANNELS = [960, 256, 128, 64]           # x2 upsample each => stride 4 out

HEAD_OUT = {
    "heatmaps": NUM_CLASSES,
    "whs": 2,
    "offsets": 2,
    "heatmaps_keypoints": NUM_KEYPOINTS,
    "xy_keypoints": 2 * NUM_KEYPOINTS,
    "offsets_keypoints": 2,
}
TOTAL_HEAD_OUT = sum(HEAD_OUT.values())          # 58


def init_params(key):
    params = {"backbone": [], "deconv": [], "head": {}}

    def nrm(k, shape, scale=0.05):
        return scale * jax.random.normal(k, shape, dtype=jnp.float32)

    keys = iter(jax.random.split(key, 64))

    # Backbone (MobileNetV3-Large surrogate): stride-2 3x3 convs.
    for cin, cout in zip(BACKBONE_CHANNELS[:-1], BACKBONE_CHANNELS[1:]):
        w = nrm(next(keys), (cout, cin, 3, 3))
        b = jnp.zeros((cout,), jnp.float32)
        params["backbone"].append((w, b))

    # DeconvLayers: 3x (ConvTranspose2d k4 s2 p1 + ReLU).
    for cin, cout in zip(DECONV_CHANNELS[:-1], DECONV_CHANNELS[1:]):
        w = nrm(next(keys), (cin, cout, 4, 4))
        b = jnp.zeros((cout,), jnp.float32)
        params["deconv"].append((w, b))

    # CenterNetHead: per output, Conv3x3 -> ReLU -> Conv1x1.
    for name, out_ch in HEAD_OUT.items():
        w1 = nrm(next(keys), (HEAD_CONV, DECONV_CHANNELS[-1], 3, 3))
        b1 = jnp.zeros((HEAD_CONV,), jnp.float32)
        w2 = nrm(next(keys), (out_ch, HEAD_CONV, 1, 1))
        b2 = jnp.zeros((out_ch,), jnp.float32)
        params["head"][name] = (w1, b1, w2, b2)
    return params


def prepare_conv(w, b, cin_pad=None):
    """PyTorch Conv2d weight (Cout, Cin, KH, KW) -> padded bf16 matmul operands whose K rows
    line up with an input activation carried with cin_pad channels (extra rows are zero)."""
    cout, cin, kh, kw = w.shape
    if cin_pad is None:
        cin_pad = cin
    wt = jnp.transpose(w, (2, 3, 1, 0))                       # (KH, KW, Cin, Cout)
    wt = jnp.pad(wt, ((0, 0), (0, 0), (0, cin_pad - cin), (0, 0)))
    K = kh * kw * cin_pad
    wm = wt.reshape(K, cout)                                  # row order matches _im2col
    Kp, Np = _round_up(K, 128), _round_up(cout, 128)
    wm_p = _pad2d(wm, Kp, Np).astype(jnp.bfloat16)
    bias_p = _pad2d(b.reshape(1, cout), 1, Np).astype(jnp.float32)
    return wm_p, bias_p


def prepare_deconv(w, b, cin_pad=None):
    """PyTorch ConvTranspose2d weight (Cin, Cout, 4, 4) (stride 2, padding 1) -> stacked
    sub-pixel phase weights (4, Kp, Np) bf16, each a 2x2 conv over the 1-padded input:
      y[2m+di, 2n+dj] = sum_{p,q} xpad[m+di+p, n+dj+q] * w[:, :, 3-di-2p, 3-dj-2q]"""
    cin, cout, kh, kw = w.shape
    assert (kh, kw) == (4, 4)
    if cin_pad is None:
        cin_pad = cin
    wt = jnp.transpose(w, (2, 3, 0, 1))                       # (KH, KW, Cin, Cout)
    wt = jnp.pad(wt, ((0, 0), (0, 0), (0, cin_pad - cin), (0, 0)))
    K = 4 * cin_pad
    Kp, Np = _round_up(K, 128), _round_up(cout, 128)
    phase_wms = []
    for di in (0, 1):
        for dj in (0, 1):
            wp = jnp.stack([
                jnp.stack([wt[3 - di - 2 * p, 3 - dj - 2 * q] for q in (0, 1)], 0)
                for p in (0, 1)], 0)                          # (2, 2, cin_pad, cout)
            phase_wms.append(_pad2d(wp.reshape(K, cout), Kp, Np))
    b_stack = jnp.stack(phase_wms, 0).astype(jnp.bfloat16)    # (4, Kp, Np)
    bias_p = _pad2d(b.reshape(1, cout), 1, Np).astype(jnp.float32)
    return b_stack, bias_p


def prepare_params(params):
    """Convert raw (PyTorch-layout) params into padded bf16 matmul operands, once, outside
    jit.  Channel padding is chained: each layer is prepared against the padded channel count
    its input activation is carried with."""
    prepared = {"backbone": [], "deconv": []}
    cin_pad = BACKBONE_CHANNELS[0]                             # raw images: 3 channels
    for (w, b) in params["backbone"]:
        wm_p, bias_p = prepare_conv(w, b, cin_pad=cin_pad)
        prepared["backbone"].append((wm_p, bias_p))
        cin_pad = wm_p.shape[1]
    for (w, b) in params["deconv"]:
        b_stack, bias_p = prepare_deconv(w, b, cin_pad=cin_pad)
        prepared["deconv"].append((b_stack, bias_p))
        cin_pad = b_stack.shape[2]

    # Fuse the 6 head branches: one 3x3 conv (Cout = 6*64 = 384) + one block-diagonal 1x1 conv.
    w1s, b1s = [], []
    w2_bd = jnp.zeros((TOTAL_HEAD_OUT, len(HEAD_OUT) * HEAD_CONV, 1, 1), jnp.float32)
    b2_all = jnp.zeros((TOTAL_HEAD_OUT,), jnp.float32)
    off = 0
    for i, (name, c) in enumerate(HEAD_OUT.items()):
        w1, b1, w2, b2 = params["head"][name]
        w1s.append(w1)
        b1s.append(b1)
        w2_bd = w2_bd.at[off:off + c, i * HEAD_CONV:(i + 1) * HEAD_CONV].set(w2)
        b2_all = b2_all.at[off:off + c].set(b2)
        off += c
    w1_p, b1_p = prepare_conv(jnp.concatenate(w1s, 0), jnp.concatenate(b1s, 0),
                              cin_pad=cin_pad)                 # (1152, 384)
    w2_p, b2_p = prepare_conv(w2_bd, b2_all, cin_pad=w1_p.shape[1])   # (384, 128)
    prepared["head"] = (w1_p, b1_p, w2_p, b2_p)
    return prepared


# ----------------------------------------------------------------------------
# Forward pass (mirrors CenterNet.forward); jit the whole thing: 9 pallas_calls total.
# ----------------------------------------------------------------------------
def centernet_forward(prepared, batch):
    images, _targets = batch                       # images: (N, 3, H, W) NCHW, pre-stacked
    x = jnp.transpose(images, (0, 2, 3, 1)).astype(jnp.bfloat16)   # -> NHWC bf16

    # self.backbone(images): 5 stride-2 3x3 convs (channel-padded activations carried).
    for (wm, bias) in prepared["backbone"]:
        x = conv2d(x, wm, bias, kh=3, kw=3, stride=2, padding=1, relu=True)

    # self.upsample(features): 3x ConvTranspose2d(k4, s2, p1) + ReLU, fused sub-pixel phases.
    for (b_stack, bias) in prepared["deconv"]:
        x = conv_transpose2d_subpixel(x, b_stack, bias, relu=True)

    # self.head(up_features): six branches fused into ONE pallas_call, then split.
    w1_p, b1_p, w2_p, b2_p = prepared["head"]
    h = head_fused(x, w1_p, b1_p, w2_p, b2_p)      # (N, H, W, 128) f32, first 58 ch real

    pred_dict = {}
    off = 0
    for name, c in HEAD_OUT.items():
        pred_dict[name] = jnp.transpose(h[..., off:off + c], (0, 3, 1, 2))  # back to NCHW
        off += c
    return pred_dict


# ----------------------------------------------------------------------------
if __name__ == "__main__":
    key = jax.random.PRNGKey(0)
    k_img, k_par, k_chk = jax.random.split(key, 3)

    # Small, consistent input: batch=2 RGB images of 64x64 -> head outputs at 16x16.
    images = jax.random.normal(k_img, (2, 3, 64, 64), dtype=jnp.float32)
    params = init_params(k_par)
    prepared = prepare_params(params)

    k_dc, k_cv, k_hd = jax.random.split(k_chk, 3)

    # --- check 1: conv2d with per-tap channel padding vs f32 dense reference (tight tol;
    #              inputs are bf16-quantized so only accumulation order differs) ---
    kb1, kb2, kb3 = jax.random.split(k_cv, 3)
    cin_c, cout_c = 40, 24
    xc = jax.random.normal(kb1, (1, 8, 8, cin_c), jnp.float32).astype(jnp.bfloat16)
    wc = (0.1 * jax.random.normal(kb2, (cout_c, cin_c, 3, 3), jnp.float32)
          ).astype(jnp.bfloat16).astype(jnp.float32)
    bc = 0.1 * jax.random.normal(kb3, (cout_c,), jnp.float32)
    wm_c, bias_c = prepare_conv(wc, bc, cin_pad=128)
    x_padc = jnp.pad(xc, ((0, 0), (0, 0), (0, 0), (0, 128 - cin_c)))
    got = conv2d(x_padc, wm_c, bias_c, kh=3, kw=3, stride=2, padding=1, relu=True,
                 out_dtype=jnp.float32)[..., :cout_c]
    ref = jax.lax.conv_general_dilated(
        xc.astype(jnp.float32), jnp.transpose(wc, (2, 3, 1, 0)),
        window_strides=(2, 2), padding=[(1, 1), (1, 1)],
        dimension_numbers=("NHWC", "HWIO", "NHWC"),
        precision=jax.lax.Precision.HIGHEST) + bc
    ref = jnp.maximum(ref, 0.0)
    err = float(jnp.max(jnp.abs(got - ref)))
    assert err < 2e-3, f"conv2d (padded-channel) mismatch: {err}"

    # --- check 2: fused sub-pixel ConvTranspose2d vs dense dilated-conv reference ---
    kc1, kc2, kc3 = jax.random.split(k_dc, 3)
    cin_t, cout_t = 8, 8
    xt = jax.random.normal(kc1, (1, 4, 4, cin_t), jnp.float32).astype(jnp.bfloat16)
    wt = (0.1 * jax.random.normal(kc2, (cin_t, cout_t, 4, 4), jnp.float32)
          ).astype(jnp.bfloat16).astype(jnp.float32)
    bt = 0.1 * jax.random.normal(kc3, (cout_t,), jnp.float32)
    bstk, ph_bias = prepare_deconv(wt, bt)
    got = conv_transpose2d_subpixel(xt, bstk, ph_bias, relu=True,
                                    out_dtype=jnp.float32)[..., :cout_t]
    rhs = jnp.transpose(wt[:, :, ::-1, ::-1], (2, 3, 0, 1))  # HWIO, spatially flipped
    ref = jax.lax.conv_general_dilated(
        xt.astype(jnp.float32), rhs, window_strides=(1, 1), padding=[(2, 2), (2, 2)],
        lhs_dilation=(2, 2), dimension_numbers=("NHWC", "HWIO", "NHWC"),
        precision=jax.lax.Precision.HIGHEST) + bt
    ref = jnp.maximum(ref, 0.0)
    err = float(jnp.max(jnp.abs(got - ref)))
    assert err < 2e-3, f"sub-pixel conv-transpose mismatch: {err}"

    # --- check 3: fused head kernel vs two-matmul reference on identical operands ---
    xh = jax.random.normal(k_hd, (1, 4, 4, 128), jnp.float32).astype(jnp.bfloat16)
    w1_p, b1_p, w2_p, b2_p = prepared["head"]
    got = head_fused(xh, w1_p, b1_p, w2_p, b2_p)
    cols_h, _, _, _ = _im2col(xh, 3, 3, 1, 1)
    hr = jnp.dot(cols_h.astype(jnp.float32), w1_p.astype(jnp.float32),
                 precision=jax.lax.Precision.HIGHEST) + b1_p
    hr = jnp.maximum(hr, 0.0).astype(jnp.bfloat16).astype(jnp.float32)
    orf = jnp.dot(hr, w2_p.astype(jnp.float32),
                  precision=jax.lax.Precision.HIGHEST) + b2_p
    err = float(jnp.max(jnp.abs(got.reshape(orf.shape) - orf)))
    assert err < 2e-3, f"fused head mismatch: {err}"

    # --- full forward under a single jit ---
    forward = jax.jit(centernet_forward)
    pred = forward(prepared, (images, None))
    for v in jax.tree_util.tree_leaves(pred):
        jax.block_until_ready(v)

    expected = {
        "heatmaps": (2, NUM_CLASSES, 16, 16),
        "whs": (2, 2, 16, 16),
        "offsets": (2, 2, 16, 16),
        "heatmaps_keypoints": (2, NUM_KEYPOINTS, 16, 16),
        "xy_keypoints": (2, 2 * NUM_KEYPOINTS, 16, 16),
        "offsets_keypoints": (2, 2, 16, 16),
    }
    for name, shape in expected.items():
        assert pred[name].shape == shape, (name, pred[name].shape, shape)

    print("KERNEL_OK")
</pallas_src>

<mosaic_0001>
module attributes {stable_mosaic.version = 11 : i64} {
  func.func @_matmul_kernel(%arg0: i32, %arg1: i32, %arg2: i32, %arg3: memref<16x1152xbf16, #tpu.memory_space<vmem>>, %arg4: memref<1152x128xbf16, #tpu.memory_space<vmem>>, %arg5: memref<1x128xf32, #tpu.memory_space<vmem>>, %arg6: memref<16x128xf32, #tpu.memory_space<vmem>>) attributes {dimension_semantics = [#tpu.dimension_semantics<parallel>, #tpu.dimension_semantics<parallel>, #tpu.dimension_semantics<arbitrary>], iteration_bounds = array<i64: 1, 1, 1>, scalar_prefetch = 0 : i64, scratch_operands = 0 : i64, tpu.core_type = #tpu.core_type<tc>, window_params = [{transform_indices = @transform_0, window_bounds = array<i64: 16, 1152>}, {transform_indices = @transform_1, window_bounds = array<i64: 1152, 128>}, {transform_indices = @transform_2, window_bounds = array<i64: 1, 128>}, {transform_indices = @transform_3, window_bounds = array<i64: 16, 128>}]} {
    %c0 = arith.constant 0 : index
    %c0_0 = arith.constant 0 : index
    %0 = vector.load %arg3[%c0, %c0_0] : memref<16x1152xbf16, #tpu.memory_space<vmem>>, vector<16x1152xbf16>
    %c0_1 = arith.constant 0 : index
    %c0_2 = arith.constant 0 : index
    %1 = vector.load %arg4[%c0_1, %c0_2] : memref<1152x128xbf16, #tpu.memory_space<vmem>>, vector<1152x128xbf16>
    %cst = arith.constant dense<0.000000e+00> : vector<16x128xf32>
    %2 = tpu.matmul %0, %1, %cst {dimension_numbers = #tpu.dot_dimension_numbers<[1], [0], [0], [1], [0, 0, 1, 1], [], []>} : vector<16x1152xbf16>, vector<1152x128xbf16>, vector<16x128xf32> -> vector<16x128xf32>
    %c0_3 = arith.constant 0 : index
    %c0_4 = arith.constant 0 : index
    %3 = vector.load %arg5[%c0_3, %c0_4] : memref<1x128xf32, #tpu.memory_space<vmem>>, vector<1x128xf32>
    %4 = vector.broadcast %3 : vector<1x128xf32> to vector<16x128xf32>
    %5 = arith.addf %2, %4 : vector<16x128xf32>
    %cst_5 = arith.constant 0.000000e+00 : f32
    %6 = vector.broadcast %cst_5 : f32 to vector<16x128xf32>
    %7 = arith.maximumf %5, %6 : vector<16x128xf32>
    %c0_6 = arith.constant 0 : index
    %c0_7 = arith.constant 0 : index
    %8 = vector.load %arg6[%c0_6, %c0_7] : memref<16x128xf32, #tpu.memory_space<vmem>>, vector<16x128xf32>
    tpu.vector_store %arg6[%c0_6, %c0_7], %7 {strides = array<i32>} : memref<16x128xf32, #tpu.memory_space<vmem>>, vector<16x128xf32>,
    return
  }
  func.func @transform_0(%arg0: i32, %arg1: i32, %arg2: i32) -> (i32, i32) {
    %c0_i32 = arith.constant 0 : i32
    return %arg0, %arg2 : i32, i32
  }
  func.func @transform_1(%arg0: i32, %arg1: i32, %arg2: i32) -> (i32, i32) {
    %c0_i32 = arith.constant 0 : i32
    return %arg2, %arg1 : i32, i32
  }
  func.func @transform_2(%arg0: i32, %arg1: i32, %arg2: i32) -> (i32, i32) {
    %c0_i32 = arith.constant 0 : i32
    %c0_i32_0 = arith.constant 0 : i32
    return %c0_i32, %arg1 : i32, i32
  }
  func.func @transform_3(%arg0: i32, %arg1: i32, %arg2: i32) -> (i32, i32) {
    %c0_i32 = arith.constant 0 : i32
    return %arg0, %arg1 : i32, i32
  }
}

</mosaic_0001>

<bundles_post_ra>
// kernel: tpu_custom_call.1
= control target key start
LH: loop header
LB: loop body
LE: loop exit
PB: predicated region body
PF: predicated region fallthrough
CT: control target
= control target key end

     0   :  { %8 = vsyncpa [#allocation3], 0  ;;  %s1347_s0 = inlined_call_operand.hbm [shape: bf16[16,1152], index: 0, kind: input, shape index: {}]   ;;  %s1348_s1 = inlined_call_operand.hbm [shape: bf16[1152,128], index: 1, kind: input, shape index: {}]   ;;  %s1349_s2 = inlined_call_operand.vmem [shape: f32[1,128], index: 2, kind: input, shape index: {}]   ;;  %s1350_s3 = inlined_call_operand.hbm [shape: f32[16,128], index: 3, kind: output, shape index: {}]  }
   0x1   :  { %9 = vsyncpa [#allocation6], 0 }
   0x2   :  { %10 = vsyncpa [#allocation4], 0  ;;  %s1277_s12 = smov [#allocation2]   ;;  %s1205_s16 = scalar_lea.hbm %s1347_s0, 1152 }
   0x3   :  { %s16_s13 = sshll.u32 %s1277_s12, 4  ;;  %p1206_p0 = scmp.ne.s32.totalorder %s1347_s0, %s1205_s16  ;;  %s17_s13 = int_to_ptr.vmem [resolvable:$true] %s16_s13 }
   0x4   :  { %p1209_p1 = scmp.lt.u32.totalorder %s1205_s16, %s1347_s0 }
   0x6   :  { %p1211_p2 = pnand %p1209_p1, %p1206_p0 }
   0x8   :  { %1214 = shalt.err (!%p1211_p2)
}
   0x9   :  { %s1215_s21 = scalar_lea.vmem %s17_s13, 1152  ;;  %p1220_p4 = scmp.lt.s32.totalorder %s17_s13, %s17_s13 }
   0xa   :  { %p1216_p3 = scmp.ne.s32.totalorder %s17_s13, %s1215_s21  ;;  %p1221_p5 = scmp.lt.s32.totalorder %s1215_s21, %s1215_s21 }
   0xc   :  { %p1222_p6 = por %p1221_p5, %p1220_p4 }
   0xe   :  { %p1223_p7 = pnand %p1222_p6, %p1216_p3 }
  0x10   :  { %1226 = shalt.err (!%p1223_p7)
}
  0x11   :  { %s1278_s22 = smov 576   ;;  %s1279_s23 = smov 36  }
  0x12   :  { %22 = dma.hbm_to_vmem [thread:$0]  %s1347_s0, 1152, %s17_s13, [#allocation3], %s1278_s22, %s1278_s22, %s1279_s23  }
  0x13   :  { %s1280_s26 = smov [#allocation5]   ;;  %s1227_s30 = scalar_lea.hbm %s1348_s1, 9216 }
  0x14   :  { %s28_s27 = sshll.u32 %s1280_s26, 4  ;;  %p1228_p8 = scmp.ne.s32.totalorder %s1348_s1, %s1227_s30  ;;  %s29_s27 = int_to_ptr.vmem [resolvable:$true] %s28_s27 }
  0x15   :  { %p1231_p9 = scmp.lt.u32.totalorder %s1227_s30, %s1348_s1 }
  0x17   :  { %p1233_p10 = pnand %p1231_p9, %p1228_p8 }
  0x19   :  { %1236 = shalt.err (!%p1233_p10)
}
  0x1a   :  { %s1237_s8 = scalar_lea.vmem %s29_s27, 9216  ;;  %p1242_p12 = scmp.lt.s32.totalorder %s29_s27, %s29_s27 }
  0x1b   :  { %p1238_p11 = scmp.ne.s32.totalorder %s29_s27, %s1237_s8  ;;  %p1243_p13 = scmp.lt.s32.totalorder %s1237_s8, %s1237_s8 }
  0x1d   :  { %p1244_p0 = por %p1243_p13, %p1242_p12 }
  0x1f   :  { %p1245_p1 = pnand %p1244_p0, %p1238_p11 }
  0x21   :  { %1248 = shalt.err (!%p1245_p1)
}
  0x22   :  { %s1281_s0 = smov 64   ;;  %s1282_s9 = smov 4  }
  0x23   :  { %34 = dma.hbm_to_vmem [thread:$0]  %s1348_s1, 9216, %s29_s27, [#allocation6], %s1281_s0, %s1281_s0, %s1282_s9  }
  0x24   :  { %1271 = dma.done.wait [#allocation3], 1152  }
  0x25   :  { %1272 = vsyncadd [#allocation3], 4294966144 }
  0x26   :  { %1273 = dma.done.wait [#allocation6], 9216  }
  0x27   :  { %1274 = vsyncadd [#allocation6], 4294958080  ;;  %v1120_v0 = vld [vmem:[#allocation5 + $0x40] sm:$0xff]   ;;  %v1124_v4 = vld [vmem:[#allocation5 + $0x48] sm:$0xff]   ;;  %vm1284_vm0 = vmmov 0  }
  0x28   :  { %v1121_v1 = vld [vmem:[#allocation5] sm:$0xff]   ;;  %992 = vmatprep.subr.bf16.mxu0 %v1120_v0  ;;  %v1125_v5 = vld [vmem:[#allocation5 + $0x8] sm:$0xff]   ;;  %v1128_v8 = vld [vmem:[#allocation5 + $0x50] sm:$0xff]  }
  0x29   :  { %v1122_v2 = vld [vmem:[#allocation5 + $0xc0] sm:$0xff]   ;;  %993 = vmatpush3.bf16.msra.mxu0 %v1121_v1  ;;  %v1126_v6 = vld [vmem:[#allocation5 + $0xc8] sm:$0xff]   ;;  %v1129_v9 = vld [vmem:[#allocation5 + $0x10] sm:$0xff]  }
  0x2a   :  { %v1123_v3 = vld [vmem:[#allocation5 + $0x80] sm:$0xff]   ;;  %1014 = vmatprep.subr.bf16.mxu1 %v1122_v2  ;;  %994 = vmatprep.subr.bf16.mxu0 %v1124_v4  ;;  %v1127_v7 = vld [vmem:[#allocation5 + $0x88] sm:$0xff]   ;;  %v1130_v10 = vld [vmem:[#allocation5 + $0xd0] sm:$0xff]  }
  0x2b   :  { %1015 = vmatpush3.bf16.msra.mxu1 %v1123_v3  ;;  %v1131_v11 = vld [vmem:[#allocation5 + $0x90] sm:$0xff]   ;;  %v1132_v12 = vld [vmem:[#allocation5 + $0x58] sm:$0xff]   ;;  %v1136_v16 = vld [vmem:[#allocation5 + $0x60] sm:$0xff]  }
  0x2c   :  { %1016 = vmatprep.subr.bf16.mxu1 %v1126_v6  ;;  %v1133_v13 = vld [vmem:[#allocation5 + $0x18] sm:$0xff]   ;;  %v1137_v17 = vld [vmem:[#allocation5 + $0x20] sm:$0xff]   ;;  %v1140_v20 = vld [vmem:[#allocation5 + $0x68] sm:$0xff]   ;;  %v1283_v6 = vmov 0.0  }
  0x2d   :  { %995 = vmatpush3.bf16.msra.mxu0 %v1125_v5  ;;  %v1134_v14 = vld [vmem:[#allocation5 + $0xd8] sm:$0xff]   ;;  %v1138_v18 = vld [vmem:[#allocation5 + $0xe0] sm:$0xff]   ;;  %v1141_v21 = vld [vmem:[#allocation5 + $0x28] sm:$0xff]  }
  0x2e   :  { %996 = vmatprep.subr.bf16.mxu0 %v1128_v8  ;;  %v1135_v15 = vld [vmem:[#allocation5 + $0x98] sm:$0xff]   ;;  %v1139_v19 = vld [vmem:[#allocation5 + $0xa0] sm:$0xff]   ;;  %v1142_v22 = vld [vmem:[#allocation5 + $0xe8] sm:$0xff]  }
  0x2f   :  { %1017 = vmatpush3.bf16.msra.mxu1 %v1127_v7  ;;  %v1143_v23 = vld [vmem:[#allocation5 + $0xa8] sm:$0xff]   ;;  %v1144_v24 = vld [vmem:[#allocation5 + $0x70] sm:$0xff]   ;;  %v1148_v28 = vld [vmem:[#allocation5 + $0x78] sm:$0xff]  }
  0x30   :  { %1018 = vmatprep.subr.bf16.mxu1 %v1130_v10  ;;  %v1145_v25 = vld [vmem:[#allocation5 + $0x30] sm:$0xff]   ;;  %v1149_v29 = vld [vmem:[#allocation5 + $0x38] sm:$0xff]   ;;  %v1155_v34 = vld [vmem:[#allocation5 + $0x140] sm:$0xff]  }
  0x31   :  { %997 = vmatpush3.bf16.msra.mxu0 %v1129_v9  ;;  %v1146_v26 = vld [vmem:[#allocation5 + $0xf0] sm:$0xff]   ;;  %v1150_v30 = vld [vmem:[#allocation5 + $0xf8] sm:$0xff]   ;;  %v1156_v35 = vld [vmem:[#allocation2 + $0x8] ss:$36 sps:$4 sm:$0xff]  }
  0x32   :  { %998 = vmatprep.subr.bf16.mxu0 %v1132_v12  ;;  %v1147_v27 = vld [vmem:[#allocation5 + $0xb0] sm:$0xff]   ;;  %v1151_v31 = vld [vmem:[#allocation2] ss:$36 sps:$4 sm:$0xff]   ;;  %v1158_v36 = vld [vmem:[#allocation2 + $0xc] ss:$36 sps:$4 sm:$0xff]  }
  0x33   :  { %1019 = vmatpush3.bf16.msra.mxu1 %v1131_v11  ;;  %v1153_v32 = vld [vmem:[#allocation2 + $0x4] ss:$36 sps:$4 sm:$0xff]   ;;  %756 = vmatprep.mubr.bf16.mxu1 %v1158_v36  ;;  %v1162_v40 = vld [vmem:[#allocation5 + $0x148] sm:$0xff]   ;;  %v1166_v44 = vld [vmem:[#allocation5 + $0x150] sm:$0xff]  }
  0x34   :  { %1020 = vmatprep.subr.bf16.mxu1 %v1134_v14  ;;  %v1154_v33 = vld [vmem:[#allocation5 + $0xb8] sm:$0xff]   ;;  %715 = vmatprep.mubr.bf16.mxu0 %v1153_v32  ;;  %v1159_v37 = vld [vmem:[#allocation5 + $0x100] sm:$0xff]   ;;  %v1163_v41 = vld [vmem:[#allocation5 + $0x108] sm:$0xff]  }
  0x35   :  { %999 = vmatpush3.bf16.msra.mxu0 %v1133_v13  ;;  %v1160_v38 = vld [vmem:[#allocation5 + $0x1c0] sm:$0xff]   ;;  %v1164_v42 = vld [vmem:[#allocation5 + $0x1c8] sm:$0xff]   ;;  %v1167_v45 = vld [vmem:[#allocation5 + $0x110] sm:$0xff]  }
  0x36   :  { %1000 = vmatprep.subr.bf16.mxu0 %v1136_v16  ;;  %v1161_v39 = vld [vmem:[#allocation5 + $0x180] sm:$0xff]   ;;  %v1165_v43 = vld [vmem:[#allocation5 + $0x188] sm:$0xff]   ;;  %v1168_v46 = vld [vmem:[#allocation5 + $0x1d0] sm:$0xff]  }
  0x37   :  { %1021 = vmatpush3.bf16.msra.mxu1 %v1135_v15  ;;  %v1169_v47 = vld [vmem:[#allocation5 + $0x190] sm:$0xff]   ;;  %v1170_v48 = vld [vmem:[#allocation5 + $0x158] sm:$0xff]   ;;  %v1174_v52 = vld [vmem:[#allocation5 + $0x160] sm:$0xff]  }
  0x38   :  { %1022 = vmatprep.subr.bf16.mxu1 %v1138_v18  ;;  %v1171_v49 = vld [vmem:[#allocation5 + $0x118] sm:$0xff]   ;;  %v1175_v53 = vld [vmem:[#allocation5 + $0x120] sm:$0xff]   ;;  %v1178_v56 = vld [vmem:[#allocation5 + $0x168] sm:$0xff]  }
  0x39   :  { %1001 = vmatpush3.bf16.msra.mxu0 %v1137_v17  ;;  %v1172_v50 = vld [vmem:[#allocation5 + $0x1d8] sm:$0xff]   ;;  %v1176_v54 = vld [vmem:[#allocation5 + $0x1e0] sm:$0xff]   ;;  %v1179_v57 = vld [vmem:[#allocation5 + $0x128] sm:$0xff]  }
  0x3a   :  { %1002 = vmatprep.subr.bf16.mxu0 %v1140_v20  ;;  %v1173_v51 = vld [vmem:[#allocation5 + $0x198] sm:$0xff]   ;;  %v1177_v55 = vld [vmem:[#allocation5 + $0x1a0] sm:$0xff]   ;;  %v1180_v58 = vld [vmem:[#allocation5 + $0x1e8] sm:$0xff]  }
  0x3b   :  { %1023 = vmatpush3.bf16.msra.mxu1 %v1139_v19  ;;  %v1181_v59 = vld [vmem:[#allocation5 + $0x1a8] sm:$0xff]   ;;  %v1182_v60 = vld [vmem:[#allocation5 + $0x170] sm:$0xff]   ;;  %v1186_v0 = vld [vmem:[#allocation5 + $0x178] sm:$0xff]  }
  0x3c   :  { %1024 = vmatprep.subr.bf16.mxu1 %v1142_v22  ;;  %v1183_v61 = vld [vmem:[#allocation5 + $0x130] sm:$0xff]   ;;  %v1187_v1 = vld [vmem:[#allocation5 + $0x138] sm:$0xff]   ;;  %v1189_v3 = vld [vmem:[#allocation2 + $0x10] ss:$36 sps:$4 sm:$0xff]  }
  0x3d   :  { %1003 = vmatpush3.bf16.msra.mxu0 %v1141_v21  ;;  %v1184_v62 = vld [vmem:[#allocation5 + $0x1f0] sm:$0xff]   ;;  %v1188_v2 = vld [vmem:[#allocation5 + $0x1f8] sm:$0xff]   ;;  %v1196_v9 = vld [vmem:[#allocation5 + $0x200] sm:$0xff]  }
  0x3e   :  { %1004 = vmatprep.subr.bf16.mxu0 %v1144_v24  ;;  %v1185_v63 = vld [vmem:[#allocation5 + $0x1b0] sm:$0xff]   ;;  %v1192_v5 = vld [vmem:[#allocation5 + $0x1b8] sm:$0xff]   ;;  %v1197_v10 = vld [vmem:[#allocation5 + $0x208] sm:$0xff]  }
  0x3f   :  { %1025 = vmatpush3.bf16.msra.mxu1 %v1143_v23  ;;  %v1191_v4 = vld [vmem:[#allocation2 + $0x14] ss:$36 sps:$4 sm:$0xff]   ;;  %v1195_v8 = vld [vmem:[#allocation2 + $0x1c] ss:$36 sps:$4 sm:$0xff]   ;;  %v1200_v13 = vld [vmem:[#allocation5 + $0x220] sm:$0xff]  }
  0x40   :  { %1026 = vmatprep.subr.bf16.mxu1 %v1146_v26  ;;  %v1193_v7 = vld [vmem:[#allocation2 + $0x18] ss:$36 sps:$4 sm:$0xff]   ;;  %v1199_v12 = vld [vmem:[#allocation5 + $0x218] sm:$0xff]   ;;  %v1201_v14 = vld [vmem:[#allocation5 + $0x228] sm:$0xff]  }
  0x41   :  { %1005 = vmatpush3.bf16.msra.mxu0 %v1145_v25  ;;  %v1198_v11 = vld [vmem:[#allocation5 + $0x210] sm:$0xff]   ;;  %v1203_v16 = vld [vmem:[#allocation5 + $0x238] sm:$0xff]  }
  0x42   :  { %1006 = vmatprep.subr.bf16.mxu0 %v1148_v28  ;;  %v1202_v15 = vld [vmem:[#allocation5 + $0x230] sm:$0xff]   ;;  %v1204_v17 = vld [vmem:[#allocation2 + $0x20] ss:$36 sps:$4 sm:$0xff]  }
  0x43   :  { %1027 = vmatpush3.bf16.msra.mxu1 %v1147_v27  ;;  %v910_v19 = vld [vmem:[%s1349_s2] ss:$0 sm:$0xff]  ;;  %s1285_s2 = smov [#allocation7]  }
  0x44   :  { %1028 = vmatprep.subr.bf16.mxu1 %v1150_v30  ;;  %s897_s13 = sshll.u32 %s1285_s2, 4  ;;  %s898_s13 = int_to_ptr.vmem [resolvable:$true] %s897_s13 }
  0x45   :  { %1007 = vmatpush3.bf16.msra.mxu0 %v1149_v29  ;;  %s1249_s14 = scalar_lea.vmem %s898_s13, 256  ;;  %p1254_p3 = scmp.lt.s32.totalorder %s898_s13, %s898_s13 }
  0x46   :  { %1036 = vmatprep.subr.bf16.mxu0 %v1155_v34  ;;  %p1250_p2 = scmp.ne.s32.totalorder %s898_s13, %s1249_s14  ;;  %p1255_p4 = scmp.lt.s32.totalorder %s1249_s14, %s1249_s14 }
  0x47   :  { %1029 = vmatpush3.bf16.msra.mxu1 %v1154_v33 }
  0x48   :  { %716 = vmatmul.mubr.bf16.vlgmr.msra.gmra.mrb[0].mxu0 %v1151_v31  ;;  %1058 = vmatprep.subr.bf16.mxu1 %v1160_v38  ;;  %p1256_p5 = por %p1255_p4, %p1254_p3 }
  0x49   :  { %1037 = vmatpush3.bf16.msra.mxu0 %v1159_v37  ;;  %797 = vmatprep.mubr.bf16.mxu0 %v1191_v4 }
  0x4a   :  { %757 = vmatmul.mubr.bf16.vlgmr.msra.gmra.mrb[0].mxu1 %v1156_v35  ;;  %1038 = vmatprep.subr.bf16.mxu0 %v1162_v40  ;;  %p1257_p6 = pnand %p1256_p5, %p1250_p2 }
  0x4b   :  { %1059 = vmatpush3.bf16.msra.mxu1 %v1161_v39  ;;  %838 = vmatprep.mubr.bf16.mxu1 %v1195_v8 }
  0x4c   :  { %1060 = vmatprep.subr.bf16.mxu1 %v1164_v42 }
  0x4d   :  { %1039 = vmatpush3.bf16.msra.mxu0 %v1163_v41 }
  0x4e   :  { %1040 = vmatprep.subr.bf16.mxu0 %v1166_v44 }
  0x4f   :  { %1061 = vmatpush3.bf16.msra.mxu1 %v1165_v43 }
  0x50   :  { %1062 = vmatprep.subr.bf16.mxu1 %v1168_v46 }
  0x51   :  { %1041 = vmatpush3.bf16.msra.mxu0 %v1167_v45 }
  0x52   :  { %1042 = vmatprep.subr.bf16.mxu0 %v1170_v48 }
  0x53   :  { %1063 = vmatpush3.bf16.msra.mxu1 %v1169_v47 }
  0x54   :  { %1064 = vmatprep.subr.bf16.mxu1 %v1172_v50 }
  0x55   :  { %1043 = vmatpush3.bf16.msra.mxu0 %v1171_v49 }
  0x56   :  { %1044 = vmatprep.subr.bf16.mxu0 %v1174_v52 }
  0x57   :  { %1065 = vmatpush3.bf16.msra.mxu1 %v1173_v51 }
  0x58   :  { %1066 = vmatprep.subr.bf16.mxu1 %v1176_v54 }
  0x59   :  { %1045 = vmatpush3.bf16.msra.mxu0 %v1175_v53 }
  0x5a   :  { %1046 = vmatprep.subr.bf16.mxu0 %v1178_v56 }
  0x5b   :  { %1067 = vmatpush3.bf16.msra.mxu1 %v1177_v55 }
  0x5c   :  { %1068 = vmatprep.subr.bf16.mxu1 %v1180_v58 }
  0x5d   :  { %1047 = vmatpush3.bf16.msra.mxu0 %v1179_v57 }
  0x5e   :  { %1048 = vmatprep.subr.bf16.mxu0 %v1182_v60 }
  0x5f   :  { %1069 = vmatpush3.bf16.msra.mxu1 %v1181_v59 }
  0x60   :  { %1070 = vmatprep.subr.bf16.mxu1 %v1184_v62 }
  0x61   :  { %1049 = vmatpush3.bf16.msra.mxu0 %v1183_v61 }
  0x62   :  { %1050 = vmatprep.subr.bf16.mxu0 %v1186_v0 }
  0x63   :  { %1071 = vmatpush3.bf16.msra.mxu1 %v1185_v63 }
  0x64   :  { %1072 = vmatprep.subr.bf16.mxu1 %v1188_v2 }
  0x65   :  { %1051 = vmatpush3.bf16.msra.mxu0 %v1187_v1 }
  0x66   :  { %1089 = vmatprep.subr.bf16.mxu0 %v1283_v6 }
  0x67   :  { %1073 = vmatpush3.bf16.msra.mxu1 %v1192_v5 }
  0x68   :  { %798 = vmatmul.mubr.bf16.vlgmr.msra.gmra.mrb[4].mxu0 %v1189_v3 }
  0x69   :  { %1105 = vmatprep.mubr.msk.bf16.mxu0 %vm1284_vm0, %v1283_v6  ;;  %1090 = vmatpush3.bf16.msra.mxu0 %v1196_v9 }
  0x6a   :  { %839 = vmatmul.mubr.bf16.vlgmr.msra.gmra.mrb[4].mxu1 %v1193_v7  ;;  %1091 = vmatprep.subr.bf16.mxu0 %v1283_v6 }
  0x6d   :  { %1092 = vmatpush3.bf16.msra.mxu0 %v1197_v10 }
  0x6e   :  { %1093 = vmatprep.subr.bf16.mxu0 %v1283_v6 }
  0x71   :  { %1094 = vmatpush3.bf16.msra.mxu0 %v1198_v11 }
  0x72   :  { %1095 = vmatprep.subr.bf16.mxu0 %v1283_v6 }
  0x75   :  { %1096 = vmatpush3.bf16.msra.mxu0 %v1199_v12 }
  0x76   :  { %1097 = vmatprep.subr.bf16.mxu0 %v1283_v6 }
  0x79   :  { %1098 = vmatpush3.bf16.msra.mxu0 %v1200_v13 }
  0x7a   :  { %1099 = vmatprep.subr.bf16.mxu0 %v1283_v6 }
  0x7d   :  { %1100 = vmatpush3.bf16.msra.mxu0 %v1201_v14 }
  0x7e   :  { %1101 = vmatprep.subr.bf16.mxu0 %v1283_v6 }
  0x81   :  { %1102 = vmatpush3.bf16.msra.mxu0 %v1202_v15 }
  0x82   :  { %1103 = vmatprep.subr.bf16.mxu0 %v1283_v6 }
  0x85   :  { %1104 = vmatpush3.bf16.msra.mxu0 %v1203_v16 }
  0x88   :  { %1106 = vmatmul.mubr.bf16.vlgmr.msra.gmra.mrb[8].mxu0 %v1204_v17 }
 0x11b   :  { %v1008_v18 = vpop.f32.mrb[0].mxu0 }
 0x11c   :  { %v1009_v20 = vpop.f32.mrb[1].mxu0 }
 0x11d   :  { %v1010_v21 = vadd.f32 %v1009_v20, %v1008_v18  ;;  %v1011_v22 = vpop.f32.mrb[2].mxu0  ;;  %v1030_v23 = vpop.f32.mrb[0].mxu1 }
 0x11e   :  { %v1012_v24 = vpop.f32.mrb[3].mxu0  ;;  %v1031_v27 = vpop.f32.mrb[1].mxu1 }
 0x11f   :  { %v718_v25 = vadd.f32 %v1010_v21, %v910_v19  ;;  %v1013_v26 = vadd.f32 %v1012_v24, %v1011_v22  ;;  %v1032_v28 = vadd.f32 %v1031_v27, %v1030_v23  ;;  %v1033_v29 = vpop.f32.mrb[2].mxu1 }
 0x120   :  { %v1034_v31 = vpop.f32.mrb[3].mxu1 }
 0x121   :  { %v721_v30 = vadd.f32 %v1013_v26, %v910_v19  ;;  %v759_v32 = vadd.f32 %v1032_v28, %v718_v25  ;;  %v1035_v33 = vadd.f32 %v1034_v31, %v1033_v29 }
 0x123   :  { %v762_v34 = vadd.f32 %v1035_v33, %v721_v30 }
 0x13b   :  { %v1052_v35 = vpop.f32.mrb[4].mxu0 }
 0x13c   :  { %v1053_v36 = vpop.f32.mrb[5].mxu0 }
 0x13d   :  { %v1054_v37 = vadd.f32 %v1053_v36, %v1052_v35  ;;  %v1055_v38 = vpop.f32.mrb[6].mxu0  ;;  %v1074_v39 = vpop.f32.mrb[4].mxu1 }
 0x13e   :  { %v1056_v40 = vpop.f32.mrb[7].mxu0  ;;  %v1075_v43 = vpop.f32.mrb[5].mxu1 }
 0x13f   :  { %v800_v41 = vadd.f32 %v1054_v37, %v759_v32  ;;  %v1057_v42 = vadd.f32 %v1056_v40, %v1055_v38  ;;  %v1076_v44 = vadd.f32 %v1075_v43, %v1074_v39  ;;  %v1077_v45 = vpop.f32.mrb[6].mxu1 }
 0x140   :  { %v1078_v47 = vpop.f32.mrb[7].mxu1 }
 0x141   :  { %v803_v46 = vadd.f32 %v1057_v42, %v762_v34  ;;  %v1079_v48 = vadd.f32 %v1078_v47, %v1077_v45  ;;  %v841_v49 = vadd.f32 %v1076_v44, %v800_v41 }
 0x143   :  { %v844_v50 = vadd.f32 %v1079_v48, %v803_v46 }
 0x15b   :  { %v881_v51 = vpop.f32.mrb[8].mxu0 }
 0x15c   :  { %v882_v52 = vadd.f32 %v881_v51, %v841_v49  ;;  %v1107_v53 = vpop.f32.mrb[9].mxu0 }
 0x15d   :  { %v884_v54 = vpop.f32.mrb[10].mxu0 }
 0x15e   :  { %v888_v55 = vmax.f32 %v882_v52, 0.0  ;;  %v885_v56 = vadd.f32 %v884_v54, %v844_v50  ;;  %v1108_v57 = vpop.f32.mrb[11].mxu0 }
 0x160   :  { %890 = vst [vmem:[#allocation7] sm:$0xff] %v888_v55  ;;  %v889_v58 = vmax.f32 %v885_v56, 0.0 }
 0x162   :  { %891 = vst [vmem:[#allocation7 + $0x8] sm:$0xff] %v889_v58 }
 0x163   :  { %1260 = shalt.err (!%p1257_p6)
}
 0x164   :  { %s1261_s17 = scalar_lea.hbm %s1350_s3, 256 }
 0x165   :  { %p1262_p7 = scmp.ne.s32.totalorder %s1350_s3, %s1261_s17  ;;  %p1265_p8 = scmp.lt.u32.totalorder %s1261_s17, %s1350_s3 }
 0x167   :  { %p1267_p9 = pnand %p1265_p8, %p1262_p7 }
 0x169   :  { %1270 = shalt.err (!%p1267_p9)
}
 0x16a   :  { %s1286_s22 = smov 128   ;;  %s1287_s23 = smov 8  }
 0x16b   :  { %903 = dma.vmem_to_hbm [thread:$0]  %s898_s13, 256, %s1350_s3, [#allocation4], %s1286_s22, %s1286_s22, %s1287_s23  }
 0x16c   :  { %1275 = dma.done.wait [#allocation4], 256  }
 0x16d   :  { %1276 = vsyncadd [#allocation4], 4294967040 }
 0x16e   :  { %907 = vsyncpa [#allocation3], 1 }
 0x16f   :  { %908 = vsyncpa [#allocation6], 1 }
 0x170   :  { %909 = vsyncpa [#allocation4], 1 }

</bundles_post_ra>
